<compile_context>
chip_gen: v5e
topology: v5e:2x2
jax: 0.10.0
libtpu: 0.0.40
codegen_flags: <defaults>
</compile_context>

<pallas_src>
import functools

import jax
import jax.numpy as jnp
from jax import lax
from jax.experimental import pallas as pl
from jax.experimental.pallas import tpu as pltpu


def _round_up(n, m):
    return ((n + m - 1) // m) * m


def _device_kind():
    try:
        return jax.devices()[0].device_kind.lower()
    except Exception:
        return ""


def _is_v7():
    kind = _device_kind()
    return ("v7" in kind) or ("7x" in kind)


def _vmem_budget_bytes():
    """(chunk-sizing budget, requested scoped-VMEM limit) per TPU generation."""
    if _is_v7():                      # v7x: 64 MiB physical per TensorCore
        return 24 << 20, 40 << 20
    return 40 << 20, 64 << 20         # v5e / v6e: 128 MiB physical


def _pick_batch_groups(Bp):
    """Shard the batch over the 2 TensorCores (v7x) when there is enough batch."""
    if _is_v7() and Bp >= 16 and Bp % 16 == 0:
        return 2
    return 1


def _pick_time_chunk(T, Bg, Hp, k, itemsize, budget_bytes):
    """Largest divisor of T whose per-chunk VMEM footprint fits the budget."""
    # double-buffered u & h chunks (+ x chunk when k==3) + 3 f32 scratches
    # + a few f32 elementwise temps.
    per_t = Bg * Hp * (2 * k * itemsize + 2 * itemsize
                       + (2 * itemsize if k == 3 else 0) + 3 * 4 + 4 * 4)
    cap = max(1, budget_bytes // max(per_t, 1))
    best = 1
    for tc in range(1, T + 1):
        if T % tc == 0 and tc <= cap:
            best = tc
    return best


def _sru_recurrence_kernel(*refs, k, hidden_p, t_chunk):
    """Recurrence-only SRU kernel for one (batch-group, time-chunk) grid cell.

    refs (k == 4): u, bias, c0, h_out, c_out, c_carry, a_scr, f_scr, c_scr
    refs (k == 3): u, x, bias, c0, h_out, c_out, c_carry, a_scr, f_scr, c_scr
    u: (Tc, Bg, k*Hp)   x: (Tc, Bg, Hp)   bias: (2, Hp)   c0: (Bg, Hp)
    h: (Tc, Bg, Hp)     c: (Bg, Hp)
    """
    Hp = hidden_p
    Tc = t_chunk
    if k == 3:
        (u_ref, x_ref, b_ref, c0_ref, h_ref, c_ref,
         c_carry, a_scr, f_scr, c_scr) = refs
    else:
        (u_ref, b_ref, c0_ref, h_ref, c_ref,
         c_carry, a_scr, f_scr, c_scr) = refs
        x_ref = None

    t_id = pl.program_id(1)

    @pl.when(t_id == 0)
    def _init():
        c_carry[...] = c0_ref[...].astype(jnp.float32)

    bias = b_ref[...].astype(jnp.float32)                  # (2, Hp)
    forget_bias = bias[0:1, :].reshape(1, 1, Hp)
    reset_bias = bias[1:2, :].reshape(1, 1, Hp)

    # ---- batched pre-pass: only what the serial loop needs (a, f) ----
    forget = jax.nn.sigmoid(
        u_ref[:, :, 1 * Hp:2 * Hp].astype(jnp.float32) + forget_bias)
    a_scr[...] = u_ref[:, :, 0 * Hp:1 * Hp].astype(jnp.float32) * (1.0 - forget)
    f_scr[...] = forget

    # ---- serial part: c-only dependency chain (one FMA per step) ----
    # (A log-depth associative scan over the chunk would reduce this further;
    # the c-only loop already removes tanh/h/stores from the critical path.)
    def step(t, c):
        c = a_scr[t] + c * f_scr[t]
        c_scr[t] = c
        return c

    c = lax.fori_loop(0, Tc, step, c_carry[...], unroll=min(8, Tc))
    c_carry[...] = c

    # ---- batched post-pass: tanh + h for the whole chunk, lane-dense store ----
    reset = jax.nn.sigmoid(
        u_ref[:, :, 2 * Hp:3 * Hp].astype(jnp.float32) + reset_bias)
    if k == 3:
        x_prime = x_ref[...].astype(jnp.float32)
    else:
        x_prime = u_ref[:, :, 3 * Hp:4 * Hp].astype(jnp.float32)
    h = x_prime * (1.0 - reset) + jnp.tanh(c_scr[...]) * reset
    h_ref[...] = h.astype(h_ref.dtype)

    @pl.when(t_id == pl.num_programs(1) - 1)
    def _final():
        c_ref[...] = c.astype(c_ref.dtype)


def sru_cell_forward(x_p, weight_p, bias_p, c0_p, *, k, hidden_p, time_chunk=None):
    """One SRU layer.

    x_p: (T, Bp, Ip) batch-padded (and lane-padded when needed) input.
    weight_p: (Ip, k*Hp) gate-major lane-padded; bias_p: (2, Hp); c0_p: (Bp, Hp).
    Returns h: (T, Bp, Hp), c: (Bp, Hp) (still padded).
    """
    T, Bp, I = x_p.shape
    Hp = hidden_p
    dtype = x_p.dtype

    # GEMM hoisted out of the recurrence kernel: one big MXU matmul at full
    # utilization; the recurrence kernel then only streams U chunks.
    precision = (lax.Precision.HIGHEST
                 if jnp.dtype(dtype) == jnp.float32 else None)
    u = jnp.dot(x_p.reshape(T * Bp, I), weight_p,
                preferred_element_type=jnp.float32,
                precision=precision).astype(dtype)
    u = u.reshape(T, Bp, k * Hp)

    G = _pick_batch_groups(Bp)
    Bg = Bp // G
    budget, vmem_limit = _vmem_budget_bytes()
    if time_chunk is not None and T % time_chunk == 0:
        Tc = time_chunk
    else:
        Tc = _pick_time_chunk(T, Bg, Hp, k, jnp.dtype(dtype).itemsize, budget)
    grid = (G, T // Tc)

    in_specs = [pl.BlockSpec((Tc, Bg, k * Hp), lambda g, t: (t, g, 0))]
    inputs = [u]
    if k == 3:
        in_specs.append(pl.BlockSpec((Tc, Bg, Hp), lambda g, t: (t, g, 0)))
        inputs.append(x_p)
    in_specs += [
        pl.BlockSpec((2, Hp), lambda g, t: (0, 0)),     # bias (resident)
        pl.BlockSpec((Bg, Hp), lambda g, t: (g, 0)),    # c0 per batch group
    ]
    inputs += [bias_p, c0_p]

    kernel = functools.partial(_sru_recurrence_kernel, k=k, hidden_p=Hp,
                               t_chunk=Tc)
    h, c = pl.pallas_call(
        kernel,
        grid=grid,
        in_specs=in_specs,
        out_specs=(
            pl.BlockSpec((Tc, Bg, Hp), lambda g, t: (t, g, 0)),  # h chunk
            pl.BlockSpec((Bg, Hp), lambda g, t: (g, 0)),         # final c
        ),
        out_shape=(
            jax.ShapeDtypeStruct((T, Bp, Hp), dtype),
            jax.ShapeDtypeStruct((Bp, Hp), dtype),
        ),
        scratch_shapes=[
            pltpu.VMEM((Bg, Hp), jnp.float32),        # carried c (f32)
            pltpu.VMEM((Tc, Bg, Hp), jnp.float32),    # a = x~ * (1 - f)
            pltpu.VMEM((Tc, Bg, Hp), jnp.float32),    # f
            pltpu.VMEM((Tc, Bg, Hp), jnp.float32),    # all c_t of the chunk
        ],
        compiler_params=pltpu.CompilerParams(
            dimension_semantics=("parallel", "arbitrary"),
            vmem_limit_bytes=vmem_limit),
    )(*inputs)
    return h, c


def init_sru_params(key, input_size, hidden_size, num_layers=2, dtype=jnp.float32):
    """Matches SRUCell.init_weight (uniform weight, zero bias), stored in kernel
    layout: gate-major (Ip, k*Hp) with every gate on a 128-lane boundary."""
    H = hidden_size
    Hp = _round_up(H, 128)
    params = []
    for i in range(num_layers):
        in_sz = input_size if i == 0 else hidden_size
        k = 3 if in_sz == hidden_size else 4
        key, wkey = jax.random.split(key)
        val_range = (3.0 / in_sz) ** 0.5
        # PyTorch layout: (in_sz, H*k), last dim viewed as (H, k).
        w_pt = jax.random.uniform(wkey, (in_sz, H * k), jnp.float32,
                                  minval=-val_range, maxval=val_range)
        # -> gate-major (in_sz, k, H), lane-pad H -> Hp, flatten to (in_sz, k*Hp).
        w_gm = w_pt.reshape(in_sz, H, k).transpose(0, 2, 1)
        w_gm = jnp.pad(w_gm, ((0, 0), (0, 0), (0, Hp - H)))
        w_gm = w_gm.reshape(in_sz, k * Hp)
        # Later layers (and a k==3 first layer, whose highway path reads the
        # lane-padded input) consume Hp-wide activations -> pad weight rows.
        in_p = Hp if (i > 0 or k == 3) else in_sz
        if in_p != in_sz:
            w_gm = jnp.pad(w_gm, ((0, in_p - in_sz), (0, 0)))   # zero rows
        bias = jnp.zeros((2, Hp), jnp.float32)                  # PyTorch: zeros
        params.append({"weight": w_gm.astype(dtype),
                       "bias": bias.astype(dtype), "k": k, "in_p": in_p})
    return params


def sru_forward(params, x, hidden_size, c0=None, *, time_chunk=None):
    """Full SRU stack.  x: (T, B, input_size).  Returns (h, stacked_c)."""
    T, B, _ = x.shape
    H = hidden_size
    Hp = _round_up(H, 128)
    Bp = _round_up(B, 8)
    num_layers = len(params)
    dtype = x.dtype

    if c0 is None:
        c0_list = [jnp.zeros((Bp, Hp), dtype) for _ in range(num_layers)]
    else:
        c0_list = [jnp.pad(c0[i], ((0, Bp - B), (0, Hp - H))).astype(dtype)
                   for i in range(num_layers)]

    # Pad the batch to a sublane multiple once; lane-pad the raw input only if
    # the first layer is a k==3 layer (highway path reads the input directly).
    prev = x
    if Bp != B:
        prev = jnp.pad(prev, ((0, 0), (0, Bp - B), (0, 0)))
    if prev.shape[-1] != params[0]["in_p"]:
        prev = jnp.pad(prev, ((0, 0), (0, 0),
                              (0, params[0]["in_p"] - prev.shape[-1])))
    cs = []
    for i, p in enumerate(params):
        h, c = sru_cell_forward(prev, p["weight"], p["bias"], c0_list[i],
                                k=p["k"], hidden_p=Hp, time_chunk=time_chunk)
        prev = h                      # stays batch/lane-padded between layers
        cs.append(c)
    return prev[:, :B, :H], jnp.stack(cs)[:, :B, :H]


def _sru_reference(params, x, hidden_size):
    """Pure-JAX reference with identical semantics (for correctness check)."""
    T, B, _ = x.shape
    H = hidden_size
    Hp = params[0]["bias"].shape[-1]
    prev = x.astype(jnp.float32)
    if prev.shape[-1] != params[0]["in_p"]:
        prev = jnp.pad(prev, ((0, 0), (0, 0),
                              (0, params[0]["in_p"] - prev.shape[-1])))
    cs = []
    for p in params:
        k = p["k"]
        u = jnp.einsum("tbi,ij->tbj", prev, p["weight"].astype(jnp.float32),
                       precision=lax.Precision.HIGHEST)
        x_tilde = u[..., 0 * Hp:1 * Hp]
        forget = jax.nn.sigmoid(u[..., 1 * Hp:2 * Hp]
                                + p["bias"][0].astype(jnp.float32))
        reset = jax.nn.sigmoid(u[..., 2 * Hp:3 * Hp]
                               + p["bias"][1].astype(jnp.float32))
        x_prime = prev if k == 3 else u[..., 3 * Hp:4 * Hp]
        c = jnp.zeros((B, Hp), jnp.float32)
        hs = []
        for t in range(T):
            c = x_tilde[t] * (1.0 - forget[t]) + c * forget[t]
            hs.append(x_prime[t] * (1.0 - reset[t]) + jnp.tanh(c) * reset[t])
        prev = jnp.stack(hs)
        cs.append(c)
    return (prev[..., :H].astype(x.dtype),
            jnp.stack(cs)[..., :H].astype(x.dtype))


if __name__ == "__main__":
    T, B = 8, 2
    input_size, hidden_size, num_layers = 16, 32, 2

    key = jax.random.PRNGKey(0)
    key, xkey = jax.random.split(key)
    x = jax.random.normal(xkey, (T, B, input_size), jnp.float32)

    params = init_sru_params(key, input_size, hidden_size, num_layers)

    # time_chunk=4 -> 2 time chunks per layer, exercising the carried-c path.
    h, cs = sru_forward(params, x, hidden_size, time_chunk=4)
    h = jax.block_until_ready(h)
    cs = jax.block_until_ready(cs)

    assert h.shape == (T, B, hidden_size)
    assert cs.shape == (num_layers, B, hidden_size)
    assert jnp.all(jnp.isfinite(h)) and jnp.all(jnp.isfinite(cs))

    h_ref, cs_ref = _sru_reference(params, x, hidden_size)
    assert jnp.allclose(h, h_ref, atol=1e-5, rtol=1e-5), \
        float(jnp.abs(h - h_ref).max())
    assert jnp.allclose(cs, cs_ref, atol=1e-5, rtol=1e-5)

    print("KERNEL_OK")
</pallas_src>

<mosaic_0001>
module attributes {stable_mosaic.version = 11 : i64} {
  func.func @_sru_recurrence_kernel(%arg0: i32, %arg1: i32, %arg2: memref<4x8x512xf32, #tpu.memory_space<vmem>>, %arg3: memref<2x128xf32, #tpu.memory_space<vmem>>, %arg4: memref<8x128xf32, #tpu.memory_space<vmem>>, %arg5: memref<4x8x128xf32, #tpu.memory_space<vmem>>, %arg6: memref<8x128xf32, #tpu.memory_space<vmem>>, %arg7: memref<8x128xf32, #tpu.memory_space<vmem>>, %arg8: memref<4x8x128xf32, #tpu.memory_space<vmem>>, %arg9: memref<4x8x128xf32, #tpu.memory_space<vmem>>, %arg10: memref<4x8x128xf32, #tpu.memory_space<vmem>>) attributes {dimension_semantics = [#tpu.dimension_semantics<parallel>, #tpu.dimension_semantics<arbitrary>], iteration_bounds = array<i64: 1, 2>, scalar_prefetch = 0 : i64, scratch_operands = 4 : i64, tpu.core_type = #tpu.core_type<tc>, window_params = [{transform_indices = @transform_0, window_bounds = array<i64: 4, 8, 512>}, {pipeline_mode = #tpu.pipeline_mode<synchronous>, transform_indices = @transform_1, window_bounds = array<i64: 2, 128>}, {transform_indices = @transform_2, window_bounds = array<i64: 8, 128>}, {transform_indices = @transform_3, window_bounds = array<i64: 4, 8, 128>}, {transform_indices = @transform_4, window_bounds = array<i64: 8, 128>}]} {
    %c0_i32 = arith.constant 0 : i32
    %0 = arith.cmpi eq, %arg1, %c0_i32 : i32
    %1 = arith.extui %0 : i1 to i32
    %c0_i32_0 = arith.constant 0 : i32
    %2 = arith.cmpi ne, %1, %c0_i32_0 : i32
    scf.if %2 {
      %c0_57 = arith.constant 0 : index
      %c0_58 = arith.constant 0 : index
      %92 = vector.load %arg4[%c0_57, %c0_58] : memref<8x128xf32, #tpu.memory_space<vmem>>, vector<8x128xf32>
      %c0_59 = arith.constant 0 : index
      %c0_60 = arith.constant 0 : index
      %93 = vector.load %arg7[%c0_59, %c0_60] : memref<8x128xf32, #tpu.memory_space<vmem>>, vector<8x128xf32>
      tpu.vector_store %arg7[%c0_59, %c0_60], %92 {strides = array<i32>} : memref<8x128xf32, #tpu.memory_space<vmem>>, vector<8x128xf32>,
    } else {
    }
    %c0 = arith.constant 0 : index
    %c0_1 = arith.constant 0 : index
    %3 = vector.load %arg3[%c0, %c0_1] : memref<2x128xf32, #tpu.memory_space<vmem>>, vector<2x128xf32>
    %4 = vector.extract_strided_slice %3 {offsets = [0, 0], sizes = [1, 128], strides = [1, 1]} : vector<2x128xf32> to vector<1x128xf32>
    %5 = vector.shape_cast %4 : vector<1x128xf32> to vector<1x1x128xf32>
    %6 = vector.extract_strided_slice %3 {offsets = [1, 0], sizes = [1, 128], strides = [1, 1]} : vector<2x128xf32> to vector<1x128xf32>
    %7 = vector.shape_cast %6 : vector<1x128xf32> to vector<1x1x128xf32>
    %c0_2 = arith.constant 0 : index
    %c0_3 = arith.constant 0 : index
    %c128 = arith.constant 128 : index
    %8 = vector.load %arg2[%c0_2, %c0_3, %c128] : memref<4x8x512xf32, #tpu.memory_space<vmem>>, vector<4x8x128xf32>
    %9 = vector.broadcast %5 : vector<1x1x128xf32> to vector<4x8x128xf32>
    %10 = arith.addf %8, %9 : vector<4x8x128xf32>
    %11 = arith.negf %10 : vector<4x8x128xf32>
    %12 = math.exp %11 : vector<4x8x128xf32>
    %cst = arith.constant 1.000000e+00 : f32
    %13 = vector.broadcast %cst : f32 to vector<4x8x128xf32>
    %14 = arith.addf %13, %12 : vector<4x8x128xf32>
    %15 = arith.divf %13, %14 : vector<4x8x128xf32>
    %c0_4 = arith.constant 0 : index
    %c0_5 = arith.constant 0 : index
    %c0_6 = arith.constant 0 : index
    %16 = vector.load %arg2[%c0_4, %c0_5, %c0_6] : memref<4x8x512xf32, #tpu.memory_space<vmem>>, vector<4x8x128xf32>
    %cst_7 = arith.constant 1.000000e+00 : f32
    %17 = vector.broadcast %cst_7 : f32 to vector<4x8x128xf32>
    %18 = arith.subf %17, %15 : vector<4x8x128xf32>
    %19 = arith.mulf %16, %18 : vector<4x8x128xf32>
    %c0_8 = arith.constant 0 : index
    %c0_9 = arith.constant 0 : index
    %c0_10 = arith.constant 0 : index
    %20 = vector.load %arg8[%c0_8, %c0_9, %c0_10] : memref<4x8x128xf32, #tpu.memory_space<vmem>>, vector<4x8x128xf32>
    tpu.vector_store %arg8[%c0_8, %c0_9, %c0_10], %19 {strides = array<i32>} : memref<4x8x128xf32, #tpu.memory_space<vmem>>, vector<4x8x128xf32>,
    %c0_11 = arith.constant 0 : index
    %c0_12 = arith.constant 0 : index
    %c0_13 = arith.constant 0 : index
    %21 = vector.load %arg9[%c0_11, %c0_12, %c0_13] : memref<4x8x128xf32, #tpu.memory_space<vmem>>, vector<4x8x128xf32>
    tpu.vector_store %arg9[%c0_11, %c0_12, %c0_13], %15 {strides = array<i32>} : memref<4x8x128xf32, #tpu.memory_space<vmem>>, vector<4x8x128xf32>,
    %c0_14 = arith.constant 0 : index
    %c0_15 = arith.constant 0 : index
    %22 = vector.load %arg7[%c0_14, %c0_15] : memref<8x128xf32, #tpu.memory_space<vmem>>, vector<8x128xf32>
    %c0_i32_16 = arith.constant 0 : i32
    %23 = arith.index_cast %c0_i32_16 : i32 to index
    %c0_17 = arith.constant 0 : index
    %c0_18 = arith.constant 0 : index
    %24 = vector.load %arg8[%23, %c0_17, %c0_18] : memref<4x8x128xf32, #tpu.memory_space<vmem>>, vector<1x8x128xf32>
    %25 = vector.shape_cast %24 : vector<1x8x128xf32> to vector<8x128xf32>
    %26 = arith.index_cast %c0_i32_16 : i32 to index
    %c0_19 = arith.constant 0 : index
    %c0_20 = arith.constant 0 : index
    %27 = vector.load %arg9[%26, %c0_19, %c0_20] : memref<4x8x128xf32, #tpu.memory_space<vmem>>, vector<1x8x128xf32>
    %28 = vector.shape_cast %27 : vector<1x8x128xf32> to vector<8x128xf32>
    %29 = arith.mulf %22, %28 : vector<8x128xf32>
    %30 = arith.addf %25, %29 : vector<8x128xf32>
    %31 = arith.index_cast %c0_i32_16 : i32 to index
    %c0_21 = arith.constant 0 : index
    %c0_22 = arith.constant 0 : index
    %32 = vector.load %arg10[%31, %c0_21, %c0_22] : memref<4x8x128xf32, #tpu.memory_space<vmem>>, vector<1x8x128xf32>
    %33 = vector.shape_cast %32 : vector<1x8x128xf32> to vector<8x128xf32>
    %34 = vector.shape_cast %30 : vector<8x128xf32> to vector<1x8x128xf32>
    tpu.vector_store %arg10[%31, %c0_21, %c0_22], %34 {strides = array<i32>} : memref<4x8x128xf32, #tpu.memory_space<vmem>>, vector<1x8x128xf32>,
    %c1_i32 = arith.constant 1 : i32
    %35 = arith.index_cast %c1_i32 : i32 to index
    %c0_23 = arith.constant 0 : index
    %c0_24 = arith.constant 0 : index
    %36 = vector.load %arg8[%35, %c0_23, %c0_24] : memref<4x8x128xf32, #tpu.memory_space<vmem>>, vector<1x8x128xf32>
    %37 = vector.shape_cast %36 : vector<1x8x128xf32> to vector<8x128xf32>
    %38 = arith.index_cast %c1_i32 : i32 to index
    %c0_25 = arith.constant 0 : index
    %c0_26 = arith.constant 0 : index
    %39 = vector.load %arg9[%38, %c0_25, %c0_26] : memref<4x8x128xf32, #tpu.memory_space<vmem>>, vector<1x8x128xf32>
    %40 = vector.shape_cast %39 : vector<1x8x128xf32> to vector<8x128xf32>
    %41 = arith.mulf %30, %40 : vector<8x128xf32>
    %42 = arith.addf %37, %41 : vector<8x128xf32>
    %43 = arith.index_cast %c1_i32 : i32 to index
    %c0_27 = arith.constant 0 : index
    %c0_28 = arith.constant 0 : index
    %44 = vector.load %arg10[%43, %c0_27, %c0_28] : memref<4x8x128xf32, #tpu.memory_space<vmem>>, vector<1x8x128xf32>
    %45 = vector.shape_cast %44 : vector<1x8x128xf32> to vector<8x128xf32>
    %46 = vector.shape_cast %42 : vector<8x128xf32> to vector<1x8x128xf32>
    tpu.vector_store %arg10[%43, %c0_27, %c0_28], %46 {strides = array<i32>} : memref<4x8x128xf32, #tpu.memory_space<vmem>>, vector<1x8x128xf32>,
    %c2_i32 = arith.constant 2 : i32
    %47 = arith.index_cast %c2_i32 : i32 to index
    %c0_29 = arith.constant 0 : index
    %c0_30 = arith.constant 0 : index
    %48 = vector.load %arg8[%47, %c0_29, %c0_30] : memref<4x8x128xf32, #tpu.memory_space<vmem>>, vector<1x8x128xf32>
    %49 = vector.shape_cast %48 : vector<1x8x128xf32> to vector<8x128xf32>
    %50 = arith.index_cast %c2_i32 : i32 to index
    %c0_31 = arith.constant 0 : index
    %c0_32 = arith.constant 0 : index
    %51 = vector.load %arg9[%50, %c0_31, %c0_32] : memref<4x8x128xf32, #tpu.memory_space<vmem>>, vector<1x8x128xf32>
    %52 = vector.shape_cast %51 : vector<1x8x128xf32> to vector<8x128xf32>
    %53 = arith.mulf %42, %52 : vector<8x128xf32>
    %54 = arith.addf %49, %53 : vector<8x128xf32>
    %55 = arith.index_cast %c2_i32 : i32 to index
    %c0_33 = arith.constant 0 : index
    %c0_34 = arith.constant 0 : index
    %56 = vector.load %arg10[%55, %c0_33, %c0_34] : memref<4x8x128xf32, #tpu.memory_space<vmem>>, vector<1x8x128xf32>
    %57 = vector.shape_cast %56 : vector<1x8x128xf32> to vector<8x128xf32>
    %58 = vector.shape_cast %54 : vector<8x128xf32> to vector<1x8x128xf32>
    tpu.vector_store %arg10[%55, %c0_33, %c0_34], %58 {strides = array<i32>} : memref<4x8x128xf32, #tpu.memory_space<vmem>>, vector<1x8x128xf32>,
    %c3_i32 = arith.constant 3 : i32
    %59 = arith.index_cast %c3_i32 : i32 to index
    %c0_35 = arith.constant 0 : index
    %c0_36 = arith.constant 0 : index
    %60 = vector.load %arg8[%59, %c0_35, %c0_36] : memref<4x8x128xf32, #tpu.memory_space<vmem>>, vector<1x8x128xf32>
    %61 = vector.shape_cast %60 : vector<1x8x128xf32> to vector<8x128xf32>
    %62 = arith.index_cast %c3_i32 : i32 to index
    %c0_37 = arith.constant 0 : index
    %c0_38 = arith.constant 0 : index
    %63 = vector.load %arg9[%62, %c0_37, %c0_38] : memref<4x8x128xf32, #tpu.memory_space<vmem>>, vector<1x8x128xf32>
    %64 = vector.shape_cast %63 : vector<1x8x128xf32> to vector<8x128xf32>
    %65 = arith.mulf %54, %64 : vector<8x128xf32>
    %66 = arith.addf %61, %65 : vector<8x128xf32>
    %67 = arith.index_cast %c3_i32 : i32 to index
    %c0_39 = arith.constant 0 : index
    %c0_40 = arith.constant 0 : index
    %68 = vector.load %arg10[%67, %c0_39, %c0_40] : memref<4x8x128xf32, #tpu.memory_space<vmem>>, vector<1x8x128xf32>
    %69 = vector.shape_cast %68 : vector<1x8x128xf32> to vector<8x128xf32>
    %70 = vector.shape_cast %66 : vector<8x128xf32> to vector<1x8x128xf32>
    tpu.vector_store %arg10[%67, %c0_39, %c0_40], %70 {strides = array<i32>} : memref<4x8x128xf32, #tpu.memory_space<vmem>>, vector<1x8x128xf32>,
    %c4_i32 = arith.constant 4 : i32
    %c0_41 = arith.constant 0 : index
    %c0_42 = arith.constant 0 : index
    %71 = vector.load %arg7[%c0_41, %c0_42] : memref<8x128xf32, #tpu.memory_space<vmem>>, vector<8x128xf32>
    tpu.vector_store %arg7[%c0_41, %c0_42], %66 {strides = array<i32>} : memref<8x128xf32, #tpu.memory_space<vmem>>, vector<8x128xf32>,
    %c0_43 = arith.constant 0 : index
    %c0_44 = arith.constant 0 : index
    %c256 = arith.constant 256 : index
    %72 = vector.load %arg2[%c0_43, %c0_44, %c256] : memref<4x8x512xf32, #tpu.memory_space<vmem>>, vector<4x8x128xf32>
    %73 = vector.broadcast %7 : vector<1x1x128xf32> to vector<4x8x128xf32>
    %74 = arith.addf %72, %73 : vector<4x8x128xf32>
    %75 = arith.negf %74 : vector<4x8x128xf32>
    %76 = math.exp %75 : vector<4x8x128xf32>
    %cst_45 = arith.constant 1.000000e+00 : f32
    %77 = vector.broadcast %cst_45 : f32 to vector<4x8x128xf32>
    %78 = arith.addf %77, %76 : vector<4x8x128xf32>
    %79 = arith.divf %77, %78 : vector<4x8x128xf32>
    %c0_46 = arith.constant 0 : index
    %c0_47 = arith.constant 0 : index
    %c384 = arith.constant 384 : index
    %80 = vector.load %arg2[%c0_46, %c0_47, %c384] : memref<4x8x512xf32, #tpu.memory_space<vmem>>, vector<4x8x128xf32>
    %cst_48 = arith.constant 1.000000e+00 : f32
    %81 = vector.broadcast %cst_48 : f32 to vector<4x8x128xf32>
    %82 = arith.subf %81, %79 : vector<4x8x128xf32>
    %83 = arith.mulf %80, %82 : vector<4x8x128xf32>
    %c0_49 = arith.constant 0 : index
    %c0_50 = arith.constant 0 : index
    %c0_51 = arith.constant 0 : index
    %84 = vector.load %arg10[%c0_49, %c0_50, %c0_51] : memref<4x8x128xf32, #tpu.memory_space<vmem>>, vector<4x8x128xf32>
    %85 = math.tanh %84 : vector<4x8x128xf32>
    %86 = arith.mulf %85, %79 : vector<4x8x128xf32>
    %87 = arith.addf %83, %86 : vector<4x8x128xf32>
    %c0_52 = arith.constant 0 : index
    %c0_53 = arith.constant 0 : index
    %c0_54 = arith.constant 0 : index
    %88 = vector.load %arg5[%c0_52, %c0_53, %c0_54] : memref<4x8x128xf32, #tpu.memory_space<vmem>>, vector<4x8x128xf32>
    tpu.vector_store %arg5[%c0_52, %c0_53, %c0_54], %87 {strides = array<i32>} : memref<4x8x128xf32, #tpu.memory_space<vmem>>, vector<4x8x128xf32>,
    %c1_i32_55 = arith.constant 1 : i32
    %89 = arith.cmpi eq, %arg1, %c1_i32_55 : i32
    %90 = arith.extui %89 : i1 to i32
    %c0_i32_56 = arith.constant 0 : i32
    %91 = arith.cmpi ne, %90, %c0_i32_56 : i32
    scf.if %91 {
      %c0_57 = arith.constant 0 : index
      %c0_58 = arith.constant 0 : index
      %92 = vector.load %arg6[%c0_57, %c0_58] : memref<8x128xf32, #tpu.memory_space<vmem>>, vector<8x128xf32>
      tpu.vector_store %arg6[%c0_57, %c0_58], %66 {strides = array<i32>} : memref<8x128xf32, #tpu.memory_space<vmem>>, vector<8x128xf32>,
    } else {
    }
    return
  }
  func.func @transform_0(%arg0: i32, %arg1: i32) -> (i32, i32, i32) {
    %c0_i32 = arith.constant 0 : i32
    %c0_i32_0 = arith.constant 0 : i32
    return %arg1, %arg0, %c0_i32 : i32, i32, i32
  }
  func.func @transform_1(%arg0: i32, %arg1: i32) -> (i32, i32) {
    %c0_i32 = arith.constant 0 : i32
    %c0_i32_0 = arith.constant 0 : i32
    %c0_i32_1 = arith.constant 0 : i32
    return %c0_i32, %c0_i32_0 : i32, i32
  }
  func.func @transform_2(%arg0: i32, %arg1: i32) -> (i32, i32) {
    %c0_i32 = arith.constant 0 : i32
    %c0_i32_0 = arith.constant 0 : i32
    return %arg0, %c0_i32 : i32, i32
  }
  func.func @transform_3(%arg0: i32, %arg1: i32) -> (i32, i32, i32) {
    %c0_i32 = arith.constant 0 : i32
    %c0_i32_0 = arith.constant 0 : i32
    return %arg1, %arg0, %c0_i32 : i32, i32, i32
  }
  func.func @transform_4(%arg0: i32, %arg1: i32) -> (i32, i32) {
    %c0_i32 = arith.constant 0 : i32
    %c0_i32_0 = arith.constant 0 : i32
    return %arg0, %c0_i32 : i32, i32
  }
}

</mosaic_0001>

<bundles_post_ra>
// kernel: tpu_custom_call.1
= control target key start
LH: loop header
LB: loop body
LE: loop exit
PB: predicated region body
PF: predicated region fallthrough
CT: control target
= control target key end

     0   :  { %s1442_s0 = inlined_call_operand.hbm [shape: f32[8,8,512], index: 0, kind: input, shape index: {}]   ;;  %s1443_s1 = inlined_call_operand.hbm [shape: f32[2,128], index: 1, kind: input, shape index: {}]   ;;  %s1444_s2 = inlined_call_operand.hbm [shape: f32[8,128], index: 2, kind: input, shape index: {}]   ;;  %s1445_s3 = inlined_call_operand.hbm [shape: f32[8,8,128], index: 3, kind: output, shape index: {0}]   ;;  %s1446_s4 = inlined_call_operand.hbm [shape: f32[8,128], index: 4, kind: output, shape index: {1}]  }
   0x1   :  { %1449 = sst [smem:[#allocation20_spill]] %s1443_s1 }
   0x2   :  { %1450 = sst [smem:[#allocation21_spill]] %s1444_s2 }
   0x3   :  { %10 = vsyncpa [#allocation7], 0 }
   0x4   :  { %12 = vsyncpa [#allocation7 + $0x1], 0 }
   0x5   :  { %13 = vsyncpa [#allocation10], 0 }
   0x6   :  { %14 = vsyncpa [#allocation8], 0 }
   0x7   :  { %16 = vsyncpa [#allocation8 + $0x1], 0 }
   0x8   :  { %17 = vsyncpa [#allocation14], 0  ;;  %s1107_s15 = smov 0   ;;  %s1109_s16 = smov 0  }
   0x9   :  { %s1111_s17 = smov 0   ;;  %s1113_s18 = smov 0  }
   0xa   :  { %s1115_s19 = smov 0   ;;  %s1117_s20 = smov 0  }
   0xb LB: > { %1451 = sst [smem:[#allocation19_spill]] %s1073_s20  ;;  %s696_s21 = sadd.s32 4294967295, %s1073_s20   ;;  %s1073_s20 = sphi %s1117_s20, %s23_s20   ;;  %s1069_s19 = sphi %s1115_s19, %s1494_s19   ;;  %s1065_s18 = sphi %s1113_s18, %s1493_s18   ;;  %s1061_s17 = sphi %s1111_s17, %s1492_s17   ;;  %s1057_s16 = sphi %s1109_s16, %s1491_s16   ;;  %s1053_s15 = sphi %s1107_s15, %s1490_s15  }
   0xc   : > { %s697_s22 = sadd.s32 4294967294, %s1073_s20   ;;  %p51_p0 = scmp.ne.s32.totalorder %s1061_s17, %s1057_s16 }
   0xd   : > { %p52_p1 = scmp.eq.s32.totalorder %s1073_s20, 0  ;;  %p57_p2 = scmp.ne.s32.totalorder %s1057_s16, %s1053_s15 }
   0xe   : > { %p1145_p3 = scmp.eq.s32.totalorder %s696_s21, 0  ;;  %p1149_p4 = scmp.eq.s32.totalorder %s696_s21, 1 }
   0xf   : > { %p1153_p5 = por %p52_p1, %p51_p0  ;;  %p136_p6 = scmp.eq.s32.totalorder %s697_s22, 1 }
  0x10   : > { %p1159_p7 = por %p1145_p3, %p57_p2  ;;  %p1165_p8 = por %p1149_p4, %p51_p0 }
  0x11   : > { %p1169_p9 = por %p136_p6, %p57_p2  ;;  %p698_p10 = scmp.ge.s32.totalorder %s1073_s20, 1 }
  0x12   : > { %p169_p11 = scmp.lt.s32.totalorder %s1073_s20, 3  ;;  %s1458_s1 = sld [smem:[#allocation20_spill]] }
  0x13   : > { %s1075_s8 = smov [#allocation9]   ;;  %p701_p13 = scmp.ge.s32.totalorder %s1073_s20, 2 }
  0x14   : > { %p1178_p12 = pnand %p698_p10, %p169_p11  ;;  %s183_s9 = sshll.u32 %s1075_s8, 4  ;;  %s184_s9 = int_to_ptr.vmem [resolvable:$true] %s183_s9 }
  0x15   : > { %p764_p1 = scmp.lt.s32.totalorder %s1073_s20, 2  ;;  %s1460_s2 = sld [smem:[#allocation21_spill]] }
  0x16   : > { %p747_p0 = pneg %p1178_p12  ;;  %s1076_s14 = smov [#allocation11]  }
  0x17   : > { %p1193_p6 = pnand %p764_p1, %p1153_p5  ;;  %s197_s21 = sshll.u32 %s1076_s14, 4  ;;  %s198_s21 = int_to_ptr.vmem [resolvable:$true] %s197_s21 }
  0x18   : > { %s181_s6 = sshll.u32 %s1458_s1, 4  ;;  %p748_p2 = pnand %p747_p0, %p1145_p3  ;;  %s182_s6 = int_to_ptr.hbm [resolvable:$true] %s181_s6 }
  0x19   : > { %s208_s22 = sand.u32 1, %s1061_s17   ;;  %s32_s30 = sadd.s32 1, %s1069_s19 }
  0x1a   : > { %750 = dma.hbm_to_vmem [thread:$0]  (!%p748_p2), %s182_s6, 32, %s184_s9, [#allocation10]  }
  0x1b   : > { %s195_s12 = sshll.u32 %s1460_s2, 4  ;;  %s702_s5 = sshll.u32 %s208_s22, 7  ;;  %s196_s12 = int_to_ptr.hbm [resolvable:$true] %s195_s12 }
  0x1c   : > { %753 = dma.hbm_to_vmem [thread:$0]  (!%p748_p2), %s196_s12, 128, %s198_s21, [#allocation10]  }
  0x1d   : > { %p33_p10 = scmp.ge.s32.totalorder %s32_s30, 2  ;;  %s729_s8 = sshll.u32 %s1069_s19, 7 }
  0x1e   : > { %s212_s10 = scalar_lea.vmem [#allocation6], %s702_s5  ;;  %s220_s14 = scalar_lea.hbm %s1442_s0, %s729_s8 }
  0x1f   : > { %s223_s26 = sshll.u32 %s212_s10, 4  ;;  %s1496_s30 = smov (%p33_p10, %s32_s30), 0  ;;  %s224_s26 = int_to_ptr.vmem [resolvable:$true] %s223_s26 }
  0x20   : > { %s39_s6 = ssub.s32 %s1069_s19, %s1496_s30  ;;  %s221_s9 = sshll.u32 %s220_s14, 4  ;;  %s222_s9 = int_to_ptr.hbm [resolvable:$true] %s221_s9 }
  0x21   : > { %p42_p5 = scmp.eq.s32.totalorder %s39_s6, 0  ;;  %s1462_s12 = sadd.s32 1, %s1061_s17 }
  0x22   : > { %s209_s1 = scalar_lea.sflag [#allocation7], %s208_s22  ;;  %s1077_s2 = smov 512  }
  0x23   : > { %s1210_s21 = scalar_select %p42_p5, %s1061_s17, %s1462_s12  }
  0x24   : > { %s1078_s20 = smov 32   ;;  %235 = sbr.rel (%p1178_p12) target bundleno = 140 (0x8c), region = 32 }
  0x25   : > { %757 = dma.hbm_to_vmem [thread:$0]  (!%p1193_p6), %s222_s9, 2048, %s224_s26, %s209_s1, %s1077_s2, %s1077_s2, %s1078_s20  }
  0x26   : > { %s1217_s23 = sand.u32 (!%p1178_p12), 1, %s1057_s16  }
  0x27   : > { %s707_s5 = sshll.u32 (!%p1178_p12), %s1217_s23, 7  ;;  %s238_s8 = scalar_lea.sflag (!%p1178_p12), [#allocation7], %s1217_s23 }
  0x28   : > { %s1221_s10 = scalar_lea.vmem (!%p1178_p12), [#allocation6], %s707_s5 }
  0x29   : > { %1036 = dma.done.wait (%p1159_p7), %s238_s8, 2048  }
  0x2a   : > { %1038 = vsyncadd (%p1159_p7), %s238_s8, 4294965248 }
  0x2b   : > { %1040 = dma.done.wait (%p1145_p3), [#allocation10], 160  }
  0x2c   : > { %1042 = vsyncadd (%p1145_p3), [#allocation10], 4294967136  ;;  %s710_s1 = sshll.u32 %s1217_s23, 5  ;;  %p711_p11 = scmp.ne.s32.totalorder %s1065_s18, 0 }
  0x2d   : > { %s1232_s2 = scalar_lea.vmem [#allocation12], %s710_s1 }
  0x2e   : > { %282 = sbr.rel (%p711_p11) target bundleno = 53 (0x35), region = 48 }
  0x33   : > { %v283_v0 = vld [vmem:[#allocation11] sm:$0xff] }
  0x34   : > { %284 = vst [vmem:[#allocation2] sm:$0xff] %v283_v0 }
  0x35 PF: > { %v285_v1 = vld [vmem:[#allocation9] sm:$0x3]  ;;  %v286_v2 = vld [vmem:[%s1221_s10 + $0x8] sm:$0xff]  ;;  %v422_v7 = vld [vmem:[%s1221_s10 + $0x10] sm:$0xff]  ;;  %p720_p3 = scmp.ne.s32.totalorder %s1065_s18, 1 }
  0x36   : > { %v287_v3 = vld [vmem:[%s1221_s10 + $0x28] sm:$0xff]  ;;  %v290_v6 = vperm.slane %v285_v1, 0  ;;  %v426_v8 = vperm.slane %v285_v1, 1  ;;  %v423_v9 = vld [vmem:[%s1221_s10 + $0x30] sm:$0xff] }
  0x37   : > { %v288_v4 = vld [vmem:[%s1221_s10 + $0x48] sm:$0xff]  ;;  %v424_v14 = vld [vmem:[%s1221_s10 + $0x50] sm:$0xff] }
  0x38   : > { %v289_v5 = vld [vmem:[%s1221_s10 + $0x68] sm:$0xff]  ;;  %v291_v10 = vadd.f32 %v290_v6, %v286_v2  ;;  %v292_v11 = vadd.f32 %v290_v6, %v287_v3  ;;  %v293_v12 = vadd.f32 %v290_v6, %v288_v4  ;;  %v427_v15 = vadd.f32 %v426_v8, %v422_v7  ;;  %v425_v16 = vld [vmem:[%s1221_s10 + $0x70] sm:$0xff] }
  0x39   : > { %v294_v13 = vadd.f32 %v290_v6, %v289_v5  ;;  %v428_v20 = vadd.f32 %v426_v8, %v423_v9  ;;  %v429_v22 = vadd.f32 %v426_v8, %v424_v14  ;;  %v430_v23 = vadd.f32 %v426_v8, %v425_v16 }
  0x3a   : > { %v712_v17 = vmul.f32 -1.442695, %v291_v10  ;;  %v713_v18 = vmul.f32 -1.442695, %v292_v11  ;;  %v714_v19 = vmul.f32 -1.442695, %v293_v12 }
  0x3b   : > { %v715_v21 = vmul.f32 -1.442695, %v294_v13  ;;  %v716_v24 = vmul.f32 -1.442695, %v427_v15  ;;  %v717_v25 = vmul.f32 -1.442695, %v428_v20 }
  0x3c   : > { %825 = vpow2.f32 %v712_v17  ;;  %v718_v26 = vmul.f32 -1.442695, %v429_v22  ;;  %v719_v27 = vmul.f32 -1.442695, %v430_v23 }
  0x3d   : > { %827 = vpow2.f32 %v713_v18 }
  0x3e   : > { %829 = vpow2.f32 %v714_v19 }
  0x3f   : > { %831 = vpow2.f32 %v715_v21 }
  0x40   : > { %833 = vpow2.f32 %v716_v24 }
  0x41   : > { %835 = vpow2.f32 %v717_v25  ;;  %v391_v25 = vld [vmem:[#allocation2] sm:$0xff] }
  0x42   : > { %v826_v28 = vpop.eup %825  ;;  %837 = vpow2.f32 %v718_v26 }
  0x43   : > { %v828_v29 = vpop.eup %827  ;;  %v307_v30 = vadd.f32 1.0, %v826_v28  ;;  %839 = vpow2.f32 %v719_v27 }
  0x44   : > { %v830_v31 = vpop.eup %829  ;;  %v308_v32 = vadd.f32 1.0, %v828_v29 }
  0x45   : > { %v832_v33 = vpop.eup %831  ;;  %v1243_v34 = vadd.f32 1.0, %v830_v31  ;;  %841 = vrcp.f32 %v307_v30  ;;  %v320_v36 = vand.u32 2147483647, %v307_v30  ;;  %v322_v37 = vand.u32 2147483648, %v307_v30  ;;  %v371_v31 = vld [vmem:[%s1221_s10] sm:$0xff] }
  0x46   : > { %v1245_v35 = vadd.f32 1.0, %v832_v33  ;;  %843 = vrcp.f32 %v308_v32  ;;  %v834_v38 = vpop.eup %833  ;;  %v335_v39 = vand.u32 2147483647, %v308_v32  ;;  %v337_v40 = vand.u32 2147483648, %v308_v32 }
  0x47   : > { %845 = vrcp.f32 %v1243_v34  ;;  %v836_v41 = vpop.eup %835  ;;  %v350_v42 = vand.u32 2147483647, %v1243_v34  ;;  %v352_v43 = vand.u32 2147483648, %v1243_v34  ;;  %vm316_vm0 = vweird.f32 %v307_v30 }
  0x48   : > { %v838_v44 = vpop.eup %837  ;;  %vm331_vm1 = vweird.f32 %v308_v32  ;;  %847 = vrcp.f32 %v1245_v35  ;;  %vm1251_vm2 = vcmp.eq.f32.partialorder %v320_v36, 8.507059e+37  ;;  %v323_v47 = vor.u32 1.1754944e-38, %v322_v37 }
  0x49   : > { %v840_v45 = vpop.eup %839  ;;  %vm346_vm3 = vweird.f32 %v1243_v34  ;;  %v365_v48 = vand.u32 2147483647, %v1245_v35  ;;  %vm1257_vm4 = vcmp.eq.f32.partialorder %v335_v39, 8.507059e+37  ;;  %v338_v51 = vor.u32 1.1754944e-38, %v337_v40  ;;  %v372_v39 = vld [vmem:[%s1221_s10 + $0x20] sm:$0xff] }
  0x4a   : > { %vm361_vm5 = vweird.f32 %v1245_v35  ;;  %v1262_v52 = vadd.f32 1.0, %v834_v38  ;;  %v1264_v53 = vadd.f32 1.0, %v836_v41  ;;  %vm1266_vm6 = vcmp.eq.f32.partialorder %v350_v42, 8.507059e+37 }
  0x4b   : > { %v842_v49 = vpop.eup %841  ;;  %v353_v57 = vor.u32 1.1754944e-38, %v352_v43  ;;  %v367_v58 = vand.u32 2147483648, %v1245_v35  ;;  %v1271_v59 = vadd.f32 1.0, %v838_v44  ;;  %v1274_v62 = vadd.f32 1.0, %v840_v45  ;;  %v373_v44 = vld [vmem:[%s1221_s10 + $0x40] sm:$0xff] }
  0x4c   : > { %v844_v54 = vpop.eup %843  ;;  %v312_v55 = vmul.f32 %v842_v49, %v307_v30  ;;  %vm317_vm7 = vweird.f32 %v842_v49  ;;  %849 = vrcp.f32 %v1262_v52  ;;  %vm1277_vm9 = vcmp.eq.f32.partialorder %v365_v48, 8.507059e+37 }
  0x4d   : > { %v846_v60 = vpop.eup %845  ;;  %v327_v61 = vmul.f32 %v844_v54, %v308_v32  ;;  %vm332_vm8 = vweird.f32 %v844_v54  ;;  %v456_v4 = vand.u32 2147483647, %v1262_v52  ;;  %v458_v5 = vand.u32 2147483648, %v1262_v52  ;;  %vm1287_vm11 = vmor %vm316_vm0, %vm317_vm7 }
  0x4e   : > { %v313_v63 = vsub.f32 1.0, %v312_v55  ;;  %v342_v0 = vmul.f32 %v846_v60, %v1243_v34  ;;  %v848_v2 = vpop.eup %847  ;;  %851 = vrcp.f32 %v1264_v53  ;;  %vm347_vm10 = vweird.f32 %v846_v60  ;;  %vm1294_vm14 = vmor %vm331_vm1, %vm332_vm8 }
  0x4f   : > { %v328_v3 = vsub.f32 1.0, %v327_v61  ;;  %v357_v8 = vmul.f32 %v848_v2, %v1245_v35  ;;  %vm362_vm12 = vweird.f32 %v848_v2  ;;  %v368_v11 = vor.u32 1.1754944e-38, %v367_v58  ;;  %vm1303_vm0 = vmor %vm346_vm3, %vm347_vm10 }
  0x50   : > { %v314_v6 = vmul.f32 %v842_v49, %v313_v63  ;;  %v343_v7 = vsub.f32 1.0, %v342_v0  ;;  %vm452_vm13 = vweird.f32 %v1262_v52  ;;  %vm467_vm15 = vweird.f32 %v1264_v53  ;;  %vm1322_vm3 = vmor %vm361_vm5, %vm362_vm12 }
  0x51   : > { %v329_v10 = vmul.f32 %v844_v54, %v328_v3  ;;  %v358_v15 = vsub.f32 1.0, %v357_v8  ;;  %v471_v16 = vand.u32 2147483647, %v1264_v53  ;;  %vm1307_vm1 = vcmp.eq.f32.partialorder %v456_v4, 8.507059e+37  ;;  %v507_v8 = vld [vmem:[%s1221_s10 + $0x18] sm:$0xff] }
  0x52   : > { %v315_v12 = vadd.f32 %v842_v49, %v314_v6  ;;  %v344_v14 = vmul.f32 %v846_v60, %v343_v7  ;;  %v850_v17 = vpop.eup %849  ;;  %v459_v21 = vor.u32 1.1754944e-38, %v458_v5  ;;  %853 = vrcp.f32 %v1271_v59 }
  0x53   : > { %v330_v18 = vadd.f32 %v844_v54, %v329_v10  ;;  %v359_v24 = vmul.f32 %v848_v2, %v358_v15  ;;  %v448_v26 = vmul.f32 %v850_v17, %v1262_v52  ;;  %vm453_vm7 = vweird.f32 %v850_v17  ;;  %v374_v10 = vld [vmem:[%s1221_s10 + $0x60] sm:$0xff] }
  0x54   : > { %v319_v22 = vsel %vm1287_vm11, %v842_v49, %v315_v12  ;;  %v345_v23 = vadd.f32 %v846_v60, %v344_v14  ;;  %v852_v27 = vpop.eup %851  ;;  %v473_v32 = vand.u32 2147483648, %v1264_v53  ;;  %vm1349_vm5 = vmor %vm452_vm13, %vm453_vm7  ;;  %v486_v4 = vand.u32 2147483647, %v1271_v59 }
  0x55   : > { %v324_v28 = vsel %vm1251_vm2, %v323_v47, %v319_v22  ;;  %v334_v29 = vsel %vm1294_vm14, %v844_v54, %v330_v18  ;;  %v360_v36 = vadd.f32 %v848_v2, %v359_v24  ;;  %vm1332_vm2 = vcmp.eq.f32.partialorder %v471_v16, 8.507059e+37  ;;  %v508_v22 = vld [vmem:[%s1221_s10 + $0x38] sm:$0xff] }
  0x56   : > { %v339_v33 = vsel %vm1257_vm4, %v338_v51, %v334_v29  ;;  %v349_v34 = vsel %vm1303_vm0, %v846_v60, %v345_v23  ;;  %v375_v37 = vsub.f32 1.0, %v324_v28  ;;  %v394_v41 = vmul.f32 %v391_v25, %v324_v28 }
  0x57   : > { %v354_v35 = vsel %vm1266_vm6, %v353_v57, %v349_v34  ;;  %v376_v40 = vsub.f32 1.0, %v339_v33  ;;  %v449_v42 = vsub.f32 1.0, %v448_v26  ;;  %v364_v43 = vsel %vm1322_vm3, %v848_v2, %v360_v36  ;;  %v509_v34 = vld [vmem:[%s1221_s10 + $0x58] sm:$0xff] }
  0x58   : > { %v377_v45 = vsub.f32 1.0, %v354_v35  ;;  %v379_v46 = vmul.f32 %v375_v37, %v371_v31  ;;  %v463_v47 = vmul.f32 %v852_v27, %v1264_v53  ;;  %v854_v48 = vpop.eup %853  ;;  %v369_v49 = vsel %vm1277_vm9, %v368_v11, %v364_v43 }
  0x59   : > { %v450_v50 = vmul.f32 %v850_v17, %v449_v42  ;;  %v474_v51 = vor.u32 1.1754944e-38, %v473_v32  ;;  %vm482_vm4 = vweird.f32 %v1271_v59  ;;  %v380_v54 = vmul.f32 %v376_v40, %v372_v39 }
  0x5a   : > { %v395_v55 = vadd.f32 %v394_v41, %v379_v46  ;;  %v464_v57 = vsub.f32 1.0, %v463_v47  ;;  %vm468_vm6 = vweird.f32 %v852_v27  ;;  %v378_v58 = vsub.f32 1.0, %v369_v49 }
  0x5b   : > { %v381_v60 = vmul.f32 %v377_v45, %v373_v44  ;;  %v451_v61 = vadd.f32 %v850_v17, %v450_v50  ;;  %v478_v63 = vmul.f32 %v854_v48, %v1271_v59  ;;  %vm483_vm8 = vweird.f32 %v854_v48  ;;  %vm1358_vm9 = vmor %vm467_vm15, %vm468_vm6 }
  0x5c   : > { %v401_v0 = vmul.f32 %v395_v55, %v339_v33  ;;  %855 = vtanh.f32 %v395_v55  ;;  %v465_v1 = vmul.f32 %v852_v27, %v464_v57  ;;  %v488_v5 = vand.u32 2147483648, %v1271_v59  ;;  %vm1374_vm10 = vmor %vm482_vm4, %vm483_vm8 }
  0x5d   : > { %v455_v52 = vsel %vm1349_vm5, %v850_v17, %v451_v61  ;;  %v479_v3 = vsub.f32 1.0, %v478_v63  ;;  %857 = vrcp.f32 %v1274_v62  ;;  %vm487_vm11 = vcmp.eq.f32.partialorder %v486_v4, 8.507059e+37 }
  0x5e   : > { %v402_v6 = vadd.f32 %v401_v0, %v380_v54  ;;  %v460_v7 = vsel %vm1307_vm1, %v459_v21, %v455_v52  ;;  %v466_v9 = vadd.f32 %v852_v27, %v465_v1  ;;  %v489_v15 = vor.u32 1.1754944e-38, %v488_v5 }
  0x5f   : > { %v511_v53 = vsub.f32 1.0, %v460_v7  ;;  %v480_v11 = vmul.f32 %v854_v48, %v479_v3  ;;  %v382_v20 = vmul.f32 %v378_v58, %v374_v10  ;;  %vm497_vm12 = vweird.f32 %v1274_v62 }
  0x60   : > { %v409_v12 = vmul.f32 %v402_v6, %v354_v35  ;;  %v470_v13 = vsel %vm1358_vm9, %v852_v27, %v466_v9  ;;  %859 = vtanh.f32 %v402_v6  ;;  %v503_v36 = vand.u32 2147483648, %v1274_v62 }
  0x61   : > { %v515_v16 = vmul.f32 %v511_v53, %v507_v8  ;;  %v475_v17 = vsel %vm1332_vm2, %v474_v51, %v470_v13  ;;  %v481_v18 = vadd.f32 %v854_v48, %v480_v11  ;;  %v501_v35 = vand.u32 2147483647, %v1274_v62 }
  0x62   : > { %v856_v19 = vpop.eup %855  ;;  %v410_v21 = vadd.f32 %v409_v12, %v381_v60  ;;  %v512_v23 = vsub.f32 1.0, %v475_v17  ;;  %v504_v43 = vor.u32 1.1754944e-38, %v503_v36 }
  0x63   : > { %v527_v24 = vmul.f32 %v856_v19, %v460_v7  ;;  %v485_v59 = vsel %vm1374_vm10, %v854_v48, %v481_v18  ;;  %v858_v25 = vpop.eup %857  ;;  %vm502_vm15 = vcmp.eq.f32.partialorder %v501_v35, 8.507059e+37 }
  0x64   : > { %v417_v26 = vmul.f32 %v410_v21, %v369_v49  ;;  %861 = vtanh.f32 %v410_v21  ;;  %v490_v27 = vsel %vm487_vm11, %v489_v15, %v485_v59  ;;  %v516_v29 = vmul.f32 %v512_v23, %v508_v22 }
  0x65   : > { %v531_v28 = vadd.f32 %v527_v24, %v515_v16  ;;  %v513_v30 = vsub.f32 1.0, %v490_v27  ;;  %v493_v31 = vmul.f32 %v858_v25, %v1274_v62  ;;  %vm498_vm13 = vweird.f32 %v858_v25  ;;  %v510_v62 = vld [vmem:[%s1221_s10 + $0x78] sm:$0xff] }
  0x66   : > { %v860_v32 = vpop.eup %859  ;;  %v418_v33 = vadd.f32 %v417_v26, %v382_v20  ;;  %vm499_vm14 = vmor %vm497_vm12, %vm498_vm13 }
  0x67   : > { %535 = vst [vmem:[%s1232_s2] sm:$0xff] %v531_v28  ;;  %v528_v37 = vmul.f32 %v860_v32, %v475_v17  ;;  %v494_v38 = vsub.f32 1.0, %v493_v31  ;;  %v517_v40 = vmul.f32 %v513_v30, %v509_v34 }
  0x68   : > { %421 = vst [vmem:[#allocation2] sm:$0xff] %v418_v33  ;;  %863 = vtanh.f32 %v418_v33 }
  0x69   : > { %v532_v39 = vadd.f32 %v528_v37, %v516_v29  ;;  %v495_v41 = vmul.f32 %v858_v25, %v494_v38 }
  0x6a   : > { %v862_v42 = vpop.eup %861 }
  0x6b   : > { %536 = vst [vmem:[%s1232_s2 + $0x8] sm:$0xff] %v532_v39  ;;  %v529_v44 = vmul.f32 %v862_v42, %v490_v27  ;;  %v496_v45 = vadd.f32 %v858_v25, %v495_v41 }
  0x6d   : > { %v533_v46 = vadd.f32 %v529_v44, %v517_v40  ;;  %v500_v47 = vsel %vm499_vm14, %v858_v25, %v496_v45 }
  0x6e   : > { %v864_v48 = vpop.eup %863  ;;  %v505_v49 = vsel %vm502_vm15, %v504_v43, %v500_v47 }
  0x6f   : > { %537 = vst [vmem:[%s1232_s2 + $0x10] sm:$0xff] %v533_v46  ;;  %v514_v50 = vsub.f32 1.0, %v505_v49  ;;  %v530_v51 = vmul.f32 %v864_v48, %v505_v49 }
  0x71   : > { %v518_v54 = vmul.f32 %v514_v50, %v510_v62  ;;  %542 = sbr.rel (%p720_p3) target bundleno = 119 (0x77), region = 52 }
  0x73   : > { %v534_v55 = vadd.f32 %v530_v51, %v518_v54 }
  0x75   : > { %538 = vst [vmem:[%s1232_s2 + $0x18] sm:$0xff] %v534_v55 }
  0x76   : > { %543 = vst [vmem:[#allocation13] sm:$0xff] %v418_v33 }
  0x77 PF: > { %s730_s20 = sshll.u32 %s1065_s18, 5  ;;  %s558_s13 = sshll.u32 %s1232_s2, 4  ;;  %s559_s13 = int_to_ptr.vmem [resolvable:$true] %s558_s13 }
  0x78   : > { %s557_s7 = scalar_lea.hbm %s1445_s3, %s730_s20  ;;  %s545_s26 = scalar_lea.sflag [#allocation8], %s1217_s23 }
  0x79   : > { %s560_s22 = sshll.u32 %s557_s7, 4  ;;  %s975_s18 = scalar_lea.hbm %s1445_s3, 64  ;;  %s561_s22 = int_to_ptr.hbm [resolvable:$true] %s560_s22 }
  0x7a   : > { %s969_s11 = sshra.s32 %s561_s22, 4  ;;  %s970_s11 = int_to_ptr.hbm [resolvable:$true] %s969_s11 }
  0x7b   : > { %s971_s14 = scalar_lea.hbm %s970_s11, 32  ;;  %p976_p1 = scmp.lt.s32.totalorder %s970_s11, %s1445_s3 }
  0x7c   : > { %p972_p7 = scmp.ne.s32.totalorder %s970_s11, %s971_s14  ;;  %p977_p2 = scmp.lt.s32.totalorder %s975_s18, %s971_s14 }
  0x7e   : > { %p973_p12 = pnand %p972_p7, %p1165_p8  ;;  %p978_p6 = por %p977_p2, %p976_p1 }
  0x80   : > { %p974_p0 = pneg %p973_p12 }
  0x82   : > { %p979_p10 = pnand %p978_p6, %p974_p0 }
  0x84   : > { %982 = shalt.err (!%p979_p10)
}
  0x85   : > { %s1079_s23 = smov 128   ;;  %s1080_s8 = smov 8  }
  0x86   : > { %741 = dma.vmem_to_hbm [thread:$0]  (%p1165_p8), %s559_s13, 512, %s561_s22, %s545_s26, %s1079_s23, %s1079_s23, %s1080_s8  }
  0x87   : > { %s577_s2 = sshll.u32 %s1446_s4, 4  ;;  %s1081_s20 = smov [#allocation13]   ;;  %s578_s2 = int_to_ptr.hbm [resolvable:$true] %s577_s2 }
  0x88   : > { %s575_s24 = sshll.u32 %s1081_s20, 4  ;;  %s576_s24 = int_to_ptr.vmem [resolvable:$true] %s575_s24 }
  0x89   : > { %743 = dma.vmem_to_hbm [thread:$0]  (%p1149_p4), %s576_s24, 128, %s578_s2, [#allocation14]  }
  0x8a   : > { %1044 = dma.done.wait (%p1149_p4), [#allocation14], 128  }
  0x8b   : > { %1046 = vsyncadd (%p1149_p4), [#allocation14], 4294967168 }
  0x8c PF: > { %s1489_s28 = sld [smem:[#allocation19_spill]]  ;;  %s594_s27 = sand.u32 1, %s1053_s15  }
  0x8d   : > { %p759_p8 = pnand %p701_p13, %p1169_p9  ;;  %s595_s7 = scalar_lea.sflag [#allocation8], %s594_s27 }
  0x8f   : > { %p760_p5 = pneg %p759_p8 }
  0x91   : > { %1048 = dma.done.wait (%p760_p5), %s595_s7, 512  }
  0x92   : > { %1050 = vsyncadd (%p760_p5), %s595_s7, 4294966784  ;;  %s23_s20 = sadd.s32 1, %s1489_s28   ;;  %s1490_s15 = smov %s1057_s16 }
  0x93   : > { %p20_p11 = scmp.ge.s32.totalorder %s23_s20, 4   ;;  %s1491_s16 = smov %s1061_s17 }
  0x94   : > { %s1492_s17 = smov %s1210_s21  ;;  %s1493_s18 = smov %s1069_s19 }
  0x95   : > { %s1494_s19 = smov %s1496_s30  ;;  %22 = sbr.rel (!%p20_p11) target bundleno = 11 (0xb), region = 112 }
  0x9a   :  { %601 = vsyncpa [#allocation7], 1 }
  0x9b   :  { %603 = vsyncpa [#allocation7 + $0x1], 1 }
  0x9c   :  { %604 = vsyncpa [#allocation10], 1 }
  0x9d   :  { %605 = vsyncpa [#allocation8], 1 }
  0x9e   :  { %607 = vsyncpa [#allocation8 + $0x1], 1 }
  0x9f   :  { %608 = vsyncpa [#allocation14], 1 }

</bundles_post_ra>
